<compile_context>
chip_gen: v7x
topology: tpu7x:2x2x1
jax: 0.10.0
libtpu: 0.0.40
codegen_flags: <defaults>
</compile_context>

<pallas_src>
import functools
import math

import jax
import jax.numpy as jnp
from jax.experimental import pallas as pl
from jax.experimental.pallas import tpu as pltpu


def _encoder_mlp_kernel(num_layers, first_ref, second_ref, embT_ref,
                        w1a_ref, w1b_ref, b1_ref, *rest):
    """Fused: one-hot gather -> (Linear -> ReLU)*(L-1) -> Linear, transposed.

    rest = (w2, b2, ..., wL, bL, outT_ref); weights are torch-layout [out, in],
    biases are [out, 1], activations are [features, batch_tile].
    """
    outT_ref = rest[-1]
    param_refs = rest[:-1]

    num_cat = embT_ref.shape[1]
    tile = first_ref.shape[1]

    # Transposed one-hot gather: onehot^T[c, b] = (c == idx[b]).
    cat_ids = jax.lax.broadcasted_iota(jnp.int32, (num_cat, tile), 0)
    oh_first = (cat_ids == first_ref[...]).astype(jnp.float32)   # [num_cat, tile]
    oh_second = (cat_ids == second_ref[...]).astype(jnp.float32)

    embT = embT_ref[...]                                          # [E, num_cat] f32
    first_eT = jnp.dot(embT, oh_first, preferred_element_type=jnp.float32)   # [E, tile]
    second_eT = jnp.dot(embT, oh_second, preferred_element_type=jnp.float32)

    def mm(w, x):
        # bf16 MXU inputs, f32 accumulation.
        return jnp.dot(w.astype(jnp.bfloat16), x.astype(jnp.bfloat16),
                       preferred_element_type=jnp.float32)

    # First Linear with the concat folded in:  h1^T = W1a @ fe^T + W1b @ se^T + b1
    h = mm(w1a_ref[...], first_eT) + mm(w1b_ref[...], second_eT) + b1_ref[...]

    for layer in range(1, num_layers):
        h = jnp.maximum(h, 0.0)                     # ReLU after each hidden layer
        w_ref = param_refs[2 * (layer - 1)]
        b_ref = param_refs[2 * (layer - 1) + 1]
        h = mm(w_ref[...], h) + b_ref[...]

    outT_ref[...] = h.astype(outT_ref.dtype)


def encoder_mlp_forward(first, second, embedding, weights, biases, *, batch_tile=256):
    """Equivalent of EncoderMLP.forward.

    first, second: int32 [B] category indices.
    embedding:     [num_cat, E] table.
    weights:       list of [out, in] matrices (torch nn.Linear layout).
    biases:        list of [out] vectors.
    """
    assert batch_tile % 128 == 0, "batch_tile must be a multiple of 128 (lane axis)"
    B = first.shape[0]
    E = embedding.shape[1]
    num_layers = len(weights)
    d_out = weights[-1].shape[0]

    # >= 2 grid steps so both v7x TensorCores get work; pad batch to tile multiple.
    num_tiles = max(2, pl.cdiv(B, batch_tile))
    padded_B = num_tiles * batch_tile

    def prep_idx(idx):
        idx = idx.astype(jnp.int32)
        if padded_B != B:
            idx = jnp.pad(idx, (0, padded_B - B))   # pad with valid index 0
        return idx.reshape(1, padded_B)             # batch on lanes

    first_p = prep_idx(first)
    second_p = prep_idx(second)
    embT = embedding.T.astype(jnp.float32)          # [E, num_cat]

    w1 = weights[0]                                  # [H1, 2E]
    w1a, w1b = w1[:, :E], w1[:, E:]
    b1 = biases[0].reshape(-1, 1)

    operands = [first_p, second_p, embT, w1a, w1b, b1]
    in_specs = [
        pl.BlockSpec((1, batch_tile), lambda i: (0, i)),
        pl.BlockSpec((1, batch_tile), lambda i: (0, i)),
        pl.BlockSpec(embT.shape, lambda i: (0, 0)),
        pl.BlockSpec(w1a.shape, lambda i: (0, 0)),
        pl.BlockSpec(w1b.shape, lambda i: (0, 0)),
        pl.BlockSpec(b1.shape, lambda i: (0, 0)),
    ]
    for w, b in zip(weights[1:], biases[1:]):
        b2d = b.reshape(-1, 1)
        operands += [w, b2d]
        in_specs += [pl.BlockSpec(w.shape, lambda i: (0, 0)),
                     pl.BlockSpec(b2d.shape, lambda i: (0, 0))]

    out_spec = pl.BlockSpec((d_out, batch_tile), lambda i: (0, i))

    # Explicit VMEM budget with headroom (double-buffered blocks + resident params).
    resident = sum(int(op.size) * op.dtype.itemsize for op in operands[2:])
    per_tile = 2 * batch_tile * 4 + d_out * batch_tile * 4
    need = 2 * (resident + per_tile)
    vmem_limit = int(min(max(3 * need, 32 * 1024 * 1024), 48 * 1024 * 1024))

    outT = pl.pallas_call(
        functools.partial(_encoder_mlp_kernel, num_layers),
        out_shape=jax.ShapeDtypeStruct((d_out, padded_B), jnp.float32),
        grid_spec=pltpu.PrefetchScalarGridSpec(
            num_scalar_prefetch=0,
            grid=(num_tiles,),
            in_specs=in_specs,
            out_specs=out_spec,
        ),
        compiler_params=pltpu.CompilerParams(
            dimension_semantics=("parallel",),
            vmem_limit_bytes=vmem_limit,
        ),
    )(*operands)

    return outT[:, :B].T                            # [B, d_out]


def init_params(key, num_cat, embedding_dim, hidden_dims, output_dim):
    """Deterministic parameter init mirroring the PyTorch module (torch layouts)."""
    keys = jax.random.split(key, 1 + 2 * (len(hidden_dims) + 1))
    embedding = jax.random.normal(keys[0], (num_cat, embedding_dim), jnp.float32)

    dims = [embedding_dim * 2] + list(hidden_dims) + [output_dim]
    weights, biases = [], []
    for li in range(len(dims) - 1):
        fan_in, fan_out = dims[li], dims[li + 1]
        bound = 1.0 / math.sqrt(fan_in)
        kw, kb = keys[1 + 2 * li], keys[2 + 2 * li]
        w = jax.random.uniform(kw, (fan_out, fan_in), jnp.float32, -bound, bound)
        b = jax.random.uniform(kb, (fan_out,), jnp.float32, -bound, bound)
        weights.append(w)
        biases.append(b)
    return embedding, weights, biases


if __name__ == "__main__":
    num_cat = 16
    embedding_dim = 8
    hidden_dims = [32, 32]
    output_dim = 16
    batch = 8

    key = jax.random.PRNGKey(0)
    k_params, k_first, k_second = jax.random.split(key, 3)

    embedding, weights, biases = init_params(
        k_params, num_cat, embedding_dim, hidden_dims, output_dim
    )

    first = jax.random.randint(k_first, (batch,), 0, num_cat, dtype=jnp.int32)
    second = jax.random.randint(k_second, (batch,), 0, num_cat, dtype=jnp.int32)

    out = encoder_mlp_forward(first, second, embedding, weights, biases)
    jax.block_until_ready(out)

    # Pure-JAX f32 reference of the same math (kernel uses bf16 MXU inputs,
    # so compare with a loosened tolerance).
    h = jnp.concatenate(
        [jnp.take(embedding, first, axis=0), jnp.take(embedding, second, axis=0)],
        axis=1,
    )
    for li, (w, b) in enumerate(zip(weights, biases)):
        h = h @ w.T + b
        if li < len(weights) - 1:
            h = jnp.maximum(h, 0.0)

    assert out.shape == (batch, output_dim)
    assert jnp.allclose(out, h, atol=5e-2, rtol=5e-2), "mismatch vs. JAX reference"

    print("KERNEL_OK")
</pallas_src>

<mosaic_0001>
module attributes {stable_mosaic.version = 11 : i64} {
  func.func @_encoder_mlp_kernel(%arg0: i32, %arg1: memref<1x256xi32, #tpu.memory_space<vmem>>, %arg2: memref<1x256xi32, #tpu.memory_space<vmem>>, %arg3: memref<8x16xf32, #tpu.memory_space<vmem>>, %arg4: memref<32x8xf32, #tpu.memory_space<vmem>>, %arg5: memref<32x8xf32, #tpu.memory_space<vmem>>, %arg6: memref<32x1xf32, #tpu.memory_space<vmem>>, %arg7: memref<32x32xf32, #tpu.memory_space<vmem>>, %arg8: memref<32x1xf32, #tpu.memory_space<vmem>>, %arg9: memref<16x32xf32, #tpu.memory_space<vmem>>, %arg10: memref<16x1xf32, #tpu.memory_space<vmem>>, %arg11: memref<16x256xf32, #tpu.memory_space<vmem>>) attributes {dimension_semantics = [#tpu.dimension_semantics<parallel>], iteration_bounds = array<i64: 2>, scalar_prefetch = 0 : i64, scratch_operands = 0 : i64, tpu.core_type = #tpu.core_type<tc>, window_params = [{transform_indices = @transform_0, window_bounds = array<i64: 1, 256>}, {transform_indices = @transform_1, window_bounds = array<i64: 1, 256>}, {pipeline_mode = #tpu.pipeline_mode<synchronous>, transform_indices = @transform_2, window_bounds = array<i64: 8, 16>}, {pipeline_mode = #tpu.pipeline_mode<synchronous>, transform_indices = @transform_3, window_bounds = array<i64: 32, 8>}, {pipeline_mode = #tpu.pipeline_mode<synchronous>, transform_indices = @transform_4, window_bounds = array<i64: 32, 8>}, {pipeline_mode = #tpu.pipeline_mode<synchronous>, transform_indices = @transform_5, window_bounds = array<i64: 32, 1>}, {pipeline_mode = #tpu.pipeline_mode<synchronous>, transform_indices = @transform_6, window_bounds = array<i64: 32, 32>}, {pipeline_mode = #tpu.pipeline_mode<synchronous>, transform_indices = @transform_7, window_bounds = array<i64: 32, 1>}, {pipeline_mode = #tpu.pipeline_mode<synchronous>, transform_indices = @transform_8, window_bounds = array<i64: 16, 32>}, {pipeline_mode = #tpu.pipeline_mode<synchronous>, transform_indices = @transform_9, window_bounds = array<i64: 16, 1>}, {transform_indices = @transform_10, window_bounds = array<i64: 16, 256>}]} {
    %0 = tpu.iota {dimensions = array<i32: 0>} : vector<16x256xi32>
    %c0 = arith.constant 0 : index
    %c0_0 = arith.constant 0 : index
    %1 = vector.load %arg1[%c0, %c0_0] : memref<1x256xi32, #tpu.memory_space<vmem>>, vector<1x256xi32>
    %2 = vector.broadcast %1 : vector<1x256xi32> to vector<16x256xi32>
    %3 = arith.cmpi eq, %0, %2 : vector<16x256xi32>
    %4 = arith.extui %3 : vector<16x256xi1> to vector<16x256xi32>
    %5 = arith.sitofp %4 : vector<16x256xi32> to vector<16x256xf32>
    %c0_1 = arith.constant 0 : index
    %c0_2 = arith.constant 0 : index
    %6 = vector.load %arg2[%c0_1, %c0_2] : memref<1x256xi32, #tpu.memory_space<vmem>>, vector<1x256xi32>
    %7 = vector.broadcast %6 : vector<1x256xi32> to vector<16x256xi32>
    %8 = arith.cmpi eq, %0, %7 : vector<16x256xi32>
    %9 = arith.extui %8 : vector<16x256xi1> to vector<16x256xi32>
    %10 = arith.sitofp %9 : vector<16x256xi32> to vector<16x256xf32>
    %c0_3 = arith.constant 0 : index
    %c0_4 = arith.constant 0 : index
    %11 = vector.load %arg3[%c0_3, %c0_4] : memref<8x16xf32, #tpu.memory_space<vmem>>, vector<8x16xf32>
    %cst = arith.constant dense<0.000000e+00> : vector<8x256xf32>
    %12 = tpu.matmul %11, %5, %cst {dimension_numbers = #tpu.dot_dimension_numbers<[1], [0], [0], [1], [0, 0, 1, 1], [], []>} : vector<8x16xf32>, vector<16x256xf32>, vector<8x256xf32> -> vector<8x256xf32>
    %cst_5 = arith.constant dense<0.000000e+00> : vector<8x256xf32>
    %13 = tpu.matmul %11, %10, %cst_5 {dimension_numbers = #tpu.dot_dimension_numbers<[1], [0], [0], [1], [0, 0, 1, 1], [], []>} : vector<8x16xf32>, vector<16x256xf32>, vector<8x256xf32> -> vector<8x256xf32>
    %c0_6 = arith.constant 0 : index
    %c0_7 = arith.constant 0 : index
    %14 = vector.load %arg4[%c0_6, %c0_7] : memref<32x8xf32, #tpu.memory_space<vmem>>, vector<32x8xf32>
    %15 = arith.truncf %14 : vector<32x8xf32> to vector<32x8xbf16>
    %16 = arith.truncf %12 : vector<8x256xf32> to vector<8x256xbf16>
    %cst_8 = arith.constant dense<0.000000e+00> : vector<32x256xf32>
    %17 = tpu.matmul %15, %16, %cst_8 {dimension_numbers = #tpu.dot_dimension_numbers<[1], [0], [0], [1], [0, 0, 1, 1], [], []>} : vector<32x8xbf16>, vector<8x256xbf16>, vector<32x256xf32> -> vector<32x256xf32>
    %c0_9 = arith.constant 0 : index
    %c0_10 = arith.constant 0 : index
    %18 = vector.load %arg5[%c0_9, %c0_10] : memref<32x8xf32, #tpu.memory_space<vmem>>, vector<32x8xf32>
    %19 = arith.truncf %18 : vector<32x8xf32> to vector<32x8xbf16>
    %20 = arith.truncf %13 : vector<8x256xf32> to vector<8x256xbf16>
    %cst_11 = arith.constant dense<0.000000e+00> : vector<32x256xf32>
    %21 = tpu.matmul %19, %20, %cst_11 {dimension_numbers = #tpu.dot_dimension_numbers<[1], [0], [0], [1], [0, 0, 1, 1], [], []>} : vector<32x8xbf16>, vector<8x256xbf16>, vector<32x256xf32> -> vector<32x256xf32>
    %22 = arith.addf %17, %21 : vector<32x256xf32>
    %c0_12 = arith.constant 0 : index
    %c0_13 = arith.constant 0 : index
    %23 = vector.load %arg6[%c0_12, %c0_13] : memref<32x1xf32, #tpu.memory_space<vmem>>, vector<32x1xf32>
    %24 = vector.broadcast %23 : vector<32x1xf32> to vector<32x256xf32>
    %25 = arith.addf %22, %24 : vector<32x256xf32>
    %cst_14 = arith.constant 0.000000e+00 : f32
    %26 = vector.broadcast %cst_14 : f32 to vector<32x256xf32>
    %27 = arith.maximumf %25, %26 : vector<32x256xf32>
    %c0_15 = arith.constant 0 : index
    %c0_16 = arith.constant 0 : index
    %28 = vector.load %arg7[%c0_15, %c0_16] : memref<32x32xf32, #tpu.memory_space<vmem>>, vector<32x32xf32>
    %29 = arith.truncf %28 : vector<32x32xf32> to vector<32x32xbf16>
    %30 = arith.truncf %27 : vector<32x256xf32> to vector<32x256xbf16>
    %cst_17 = arith.constant dense<0.000000e+00> : vector<32x256xf32>
    %31 = tpu.matmul %29, %30, %cst_17 {dimension_numbers = #tpu.dot_dimension_numbers<[1], [0], [0], [1], [0, 0, 1, 1], [], []>} : vector<32x32xbf16>, vector<32x256xbf16>, vector<32x256xf32> -> vector<32x256xf32>
    %c0_18 = arith.constant 0 : index
    %c0_19 = arith.constant 0 : index
    %32 = vector.load %arg8[%c0_18, %c0_19] : memref<32x1xf32, #tpu.memory_space<vmem>>, vector<32x1xf32>
    %33 = vector.broadcast %32 : vector<32x1xf32> to vector<32x256xf32>
    %34 = arith.addf %31, %33 : vector<32x256xf32>
    %cst_20 = arith.constant 0.000000e+00 : f32
    %35 = vector.broadcast %cst_20 : f32 to vector<32x256xf32>
    %36 = arith.maximumf %34, %35 : vector<32x256xf32>
    %c0_21 = arith.constant 0 : index
    %c0_22 = arith.constant 0 : index
    %37 = vector.load %arg9[%c0_21, %c0_22] : memref<16x32xf32, #tpu.memory_space<vmem>>, vector<16x32xf32>
    %38 = arith.truncf %37 : vector<16x32xf32> to vector<16x32xbf16>
    %39 = arith.truncf %36 : vector<32x256xf32> to vector<32x256xbf16>
    %cst_23 = arith.constant dense<0.000000e+00> : vector<16x256xf32>
    %40 = tpu.matmul %38, %39, %cst_23 {dimension_numbers = #tpu.dot_dimension_numbers<[1], [0], [0], [1], [0, 0, 1, 1], [], []>} : vector<16x32xbf16>, vector<32x256xbf16>, vector<16x256xf32> -> vector<16x256xf32>
    %c0_24 = arith.constant 0 : index
    %c0_25 = arith.constant 0 : index
    %41 = vector.load %arg10[%c0_24, %c0_25] : memref<16x1xf32, #tpu.memory_space<vmem>>, vector<16x1xf32>
    %42 = vector.broadcast %41 : vector<16x1xf32> to vector<16x256xf32>
    %43 = arith.addf %40, %42 : vector<16x256xf32>
    %c0_26 = arith.constant 0 : index
    %c0_27 = arith.constant 0 : index
    %44 = vector.load %arg11[%c0_26, %c0_27] : memref<16x256xf32, #tpu.memory_space<vmem>>, vector<16x256xf32>
    tpu.vector_store %arg11[%c0_26, %c0_27], %43 {strides = array<i32>} : memref<16x256xf32, #tpu.memory_space<vmem>>, vector<16x256xf32>,
    return
  }
  func.func @transform_0(%arg0: i32) -> (i32, i32) {
    %c0_i32 = arith.constant 0 : i32
    %c0_i32_0 = arith.constant 0 : i32
    return %c0_i32, %arg0 : i32, i32
  }
  func.func @transform_1(%arg0: i32) -> (i32, i32) {
    %c0_i32 = arith.constant 0 : i32
    %c0_i32_0 = arith.constant 0 : i32
    return %c0_i32, %arg0 : i32, i32
  }
  func.func @transform_2(%arg0: i32) -> (i32, i32) {
    %c0_i32 = arith.constant 0 : i32
    %c0_i32_0 = arith.constant 0 : i32
    %c0_i32_1 = arith.constant 0 : i32
    return %c0_i32, %c0_i32_0 : i32, i32
  }
  func.func @transform_3(%arg0: i32) -> (i32, i32) {
    %c0_i32 = arith.constant 0 : i32
    %c0_i32_0 = arith.constant 0 : i32
    %c0_i32_1 = arith.constant 0 : i32
    return %c0_i32, %c0_i32_0 : i32, i32
  }
  func.func @transform_4(%arg0: i32) -> (i32, i32) {
    %c0_i32 = arith.constant 0 : i32
    %c0_i32_0 = arith.constant 0 : i32
    %c0_i32_1 = arith.constant 0 : i32
    return %c0_i32, %c0_i32_0 : i32, i32
  }
  func.func @transform_5(%arg0: i32) -> (i32, i32) {
    %c0_i32 = arith.constant 0 : i32
    %c0_i32_0 = arith.constant 0 : i32
    %c0_i32_1 = arith.constant 0 : i32
    return %c0_i32, %c0_i32_0 : i32, i32
  }
  func.func @transform_6(%arg0: i32) -> (i32, i32) {
    %c0_i32 = arith.constant 0 : i32
    %c0_i32_0 = arith.constant 0 : i32
    %c0_i32_1 = arith.constant 0 : i32
    return %c0_i32, %c0_i32_0 : i32, i32
  }
  func.func @transform_7(%arg0: i32) -> (i32, i32) {
    %c0_i32 = arith.constant 0 : i32
    %c0_i32_0 = arith.constant 0 : i32
    %c0_i32_1 = arith.constant 0 : i32
    return %c0_i32, %c0_i32_0 : i32, i32
  }
  func.func @transform_8(%arg0: i32) -> (i32, i32) {
    %c0_i32 = arith.constant 0 : i32
    %c0_i32_0 = arith.constant 0 : i32
    %c0_i32_1 = arith.constant 0 : i32
    return %c0_i32, %c0_i32_0 : i32, i32
  }
  func.func @transform_9(%arg0: i32) -> (i32, i32) {
    %c0_i32 = arith.constant 0 : i32
    %c0_i32_0 = arith.constant 0 : i32
    %c0_i32_1 = arith.constant 0 : i32
    return %c0_i32, %c0_i32_0 : i32, i32
  }
  func.func @transform_10(%arg0: i32) -> (i32, i32) {
    %c0_i32 = arith.constant 0 : i32
    %c0_i32_0 = arith.constant 0 : i32
    return %c0_i32, %arg0 : i32, i32
  }
}

</mosaic_0001>

<bundles_post_ra>
// kernel: tpu_custom_call.1
= control target key start
LH: loop header
LB: loop body
LE: loop exit
PB: predicated region body
PF: predicated region fallthrough
CT: control target
= control target key end

     0   :  { %15 = vsyncpa [#allocation3], 0  ;;  %s1440_s0 = inlined_call_operand.vmem [shape: s32[1,512], index: 0, kind: input, shape index: {}]   ;;  %s1441_s1 = inlined_call_operand.vmem [shape: s32[1,512], index: 1, kind: input, shape index: {}]   ;;  %s1442_s2 = inlined_call_operand.vmem [shape: f32[8,16], index: 2, kind: input, shape index: {}]   ;;  %s1443_s3 = inlined_call_operand.vmem [shape: f32[32,8], index: 3, kind: input, shape index: {}]   ;;  %s1444_s4 = inlined_call_operand.vmem [shape: f32[32,8], index: 4, kind: input, shape index: {}]   ;;  %s1445_s5 = inlined_call_operand.vmem [shape: f32[32,1], index: 5, kind: input, shape index: {}]   ;;  %s1446_s6 = inlined_call_operand.vmem [shape: f32[32,32], index: 6, kind: input, shape index: {}]   ;;  %s1447_s7 = inlined_call_operand.vmem [shape: f32[32,1], index: 7, kind: input, shape index: {}]   ;;  %s1448_s8 = inlined_call_operand.vmem [shape: f32[16,32], index: 8, kind: input, shape index: {}]   ;;  %s1449_s9 = inlined_call_operand.vmem [shape: f32[16,1], index: 9, kind: input, shape index: {}]   ;;  %s1450_s10 = inlined_call_operand.hbm [shape: f32[16,512], index: 10, kind: output, shape index: {}]  }
   0x1   :  { %17 = vsyncpa [#allocation3 + $0x1], 0  ;;  %s1240_s13 = smov 0   ;;  %s1242_s14 = smov 0  }
   0x2   :  { %s1244_s15 = smov 0   ;;  %s1246_s16 = smov 0  }
   0x3 LB: > { %s1261_s17 = sadd.s32 4294967295, %s1176_s16   ;;  %s1011_s18 = sadd.s32 4294967294, %s1176_s16   ;;  %s1176_s16 = sphi %s1246_s16, %s1456_s16   ;;  %s1172_s15 = sphi %s1244_s15, %s1455_s15   ;;  %s1168_s14 = sphi %s1242_s14, %s1454_s14   ;;  %s1164_s13 = sphi %s1240_s13, %s1453_s13  }
   0x4   : > { %s1265_s19 = sadd.s32 1, %s1176_s16   ;;  %s250_s20 = sadd.s32 1, %s1172_s15 }
   0x5   : > { %s247_s21 = ssub.s32 %s1176_s16, %s1265_s19  ;;  %p260_p0 = scmp.ne.s32.totalorder %s1172_s15, %s1168_s14 }
   0x6   : > { %p248_p1 = scmp.eq.s32.totalorder %s247_s21, 0  ;;  %p261_p2 = scmp.eq.s32.totalorder %s1261_s17, 1 }
   0x7   : > { %p266_p3 = scmp.ne.s32.totalorder %s1168_s14, %s1164_s13  ;;  %p267_p4 = scmp.eq.s32.totalorder %s1011_s18, 1 }
   0x8   : > { %s1276_s22 = scalar_select %p248_p1, %s1172_s15, %s250_s20  }
   0x9   : > { %p1278_p5 = por %p261_p2, %p260_p0  ;;  %p1282_p6 = por %p267_p4, %p266_p3 }
   0xa   : > { %p1014_p7 = scmp.ge.s32.totalorder %s1176_s16, 1  ;;  %p325_p8 = scmp.lt.s32.totalorder %s1176_s16, 3 }
   0xc   : > { %p326_p9 = pnand %p1014_p7, %p325_p8 }
   0xd   : > { %s1016_s25 = sshll.u32 (!%p326_p9), %s1261_s17, 1  ;;  %v378_v0 = vlaneseq (!%p326_p9)  ;;  %v1178_v1 = vmov (!%p326_p9), 0.0   ;;  %v1179_v12 = vmov (!%p326_p9), 1.0|1.0   ;;  %v423_v13 = vld [vmem:[%s1442_s2] sm:$0xff] (!%p326_p9)  ;;  %vm424_vm10 = vcmask (!%p326_p9), 130048  }
   0xe   : > { %329 = sbr.rel (%p326_p9) target bundleno = 966 (0x3c6), region = 60  ;;  %p367_p10 = scmp.lt.s32.totalorder (!%p326_p9), %s1016_s25, 3  ;;  %563 = vmatprep.mubr.f32.mxu1 (!%p326_p9), %v1178_v1  ;;  %492 = vmatprep.mubr.f32.mxu0 (!%p326_p9), %v1178_v1  ;;  %v1180_v14 = vmov (!%p326_p9), 0   ;;  %v718_v15 = vld [vmem:[%s1445_s5] sm:$0xff] (!%p326_p9)  ;;  %v720_v16 = vld [vmem:[%s1445_s5 + $0x10] sm:$0xff] (!%p326_p9)  ;;  %v719_v17 = vld [vmem:[%s1445_s5 + $0x8] sm:$0xff] (!%p326_p9) }
   0xf   : > { %v379_v2 = vshrl.u32 (!%p326_p9), %v378_v0, 7  ;;  %1112 = vset.pattern.permute.xlu0 (!%p326_p9), %v1180_v14  ;;  %1113 = vset.pattern.permute.xlu1 (!%p326_p9), %v1180_v14  ;;  %v721_v18 = vld [vmem:[%s1445_s5 + $0x18] sm:$0xff] (!%p326_p9)  ;;  %v768_v19 = vld [vmem:[%s1447_s7] sm:$0xff] (!%p326_p9)  ;;  %v769_v20 = vld [vmem:[%s1447_s7 + $0x8] sm:$0xff] (!%p326_p9)  ;;  %vm593_vm13 = vcmask (!%p326_p9), 1043456   ;;  %vm586_vm14 = vcmask (!%p326_p9), 64512  }
  0x10   : > { %724 = vperm.xlu0 (!%p326_p9), %1112, %v718_v15   ;;  %734 = vperm.xlu1 (!%p326_p9), %1113, %v720_v16   ;;  %v770_v21 = vld [vmem:[%s1447_s7 + $0x10] sm:$0xff] (!%p326_p9)  ;;  %v771_v22 = vld [vmem:[%s1447_s7 + $0x18] sm:$0xff] (!%p326_p9)  ;;  %v867_v23 = vld [vmem:[%s1449_s9] sm:$0xff] (!%p326_p9)  ;;  %vm792_vm15 = vcmask (!%p326_p9), 261120   ;;  %s363_s27 = sand.u32 (!%p326_p9), 1, %s1168_s14  }
  0x11   : > { %v388_v3 = vsub.s32 (!%p326_p9), 1, %v379_v2  ;;  %v384_v4 = vsub.s32 (!%p326_p9), 0, %v379_v2  ;;  %v380_v5 = vadd.s32 (!%p326_p9), 8, %v379_v2  ;;  %v868_v24 = vld [vmem:[%s1449_s9 + $0x8] sm:$0xff] (!%p326_p9)  ;;  %v578_v28 = vld [vmem:[%s1444_s4] sm:$0xff] (!%p326_p9)  ;;  %v580_v38 = vld [vmem:[%s1444_s4 + $0x10] sm:$0xff] (!%p326_p9) }
  0x12   : > { %v579_v29 = vld [vmem:[%s1444_s4 + $0x8] sm:$0xff] (!%p326_p9)  ;;  %v581_v39 = vld [vmem:[%s1444_s4 + $0x18] sm:$0xff] (!%p326_p9)  ;;  %v570_v41 = vld [vmem:[%s1443_s3] sm:$0xff] (!%p326_p9) }
  0x13   : > { %v582_v36 = vpack.c.bf16 (!%p326_p9), %v579_v29, %v578_v28  ;;  %v583_v40 = vpack.c.bf16 (!%p326_p9), %v581_v39, %v580_v38  ;;  %v571_v42 = vld [vmem:[%s1443_s3 + $0x8] sm:$0xff] (!%p326_p9)  ;;  %v572_v44 = vld [vmem:[%s1443_s3 + $0x10] sm:$0xff] (!%p326_p9)  ;;  %v573_v45 = vld [vmem:[%s1443_s3 + $0x18] sm:$0xff] (!%p326_p9) }
  0x14   : > { %729 = vperm.xlu0 (!%p326_p9), %1112, %v719_v17   ;;  %739 = vperm.xlu1 (!%p326_p9), %1113, %v721_v18   ;;  %v574_v43 = vpack.c.bf16 (!%p326_p9), %v571_v42, %v570_v41  ;;  %v575_v46 = vpack.c.bf16 (!%p326_p9), %v573_v45, %v572_v44  ;;  %v758_v15 = vld [vmem:[%s1446_s6] sm:$0xff] (!%p326_p9)  ;;  %v759_v16 = vld [vmem:[%s1446_s6 + $0x8] sm:$0xff] (!%p326_p9) }
  0x15   : > { %s1458_s25 = smov (!%p367_p10, %s1016_s25), 3  ;;  %v762_v18 = vpack.c.bf16 %v759_v16, %v758_v15 }
  0x16   : > { %s374_s28 = scalar_lea.vmem %s1441_s1, %s1458_s25  ;;  %s369_s11 = scalar_lea.vmem %s1440_s0, %s1458_s25 }
  0x17   : > { %v402_v6 = vld [vmem:[%s374_s28] sm:$0x3]  ;;  %s1015_s28 = sshll.u32 %s363_s27, 5  ;;  %s1181_s25 = smov [#allocation2]  }
  0x18   : > { %v381_v7 = vld [vmem:[%s369_s11] sm:$0x3]  ;;  %v410_v8 = vrot.slane %v402_v6, %v388_v3  ;;  %v406_v9 = vrot.slane %v402_v6, %v384_v4  ;;  %774 = vperm.xlu0 %1112, %v768_v19   ;;  %779 = vperm.xlu1 %1113, %v769_v20   ;;  %v760_v19 = vld [vmem:[%s1446_s6 + $0x10] sm:$0xff]  ;;  %v761_v20 = vld [vmem:[%s1446_s6 + $0x18] sm:$0xff]  ;;  %s365_s29 = scalar_lea.vmem [#allocation2], %s1015_s28  ;;  %s1050_s11 = sshll.u32 %s1261_s17, 8 }
  0x19   : > { %v389_v10 = vrot.slane %v381_v7, %v388_v3  ;;  %v385_v11 = vrot.slane %v381_v7, %v384_v4  ;;  %s943_s30 = sshll.u32 %s365_s29, 4  ;;  %s1397_s20 = scalar_lea.hbm %s1450_s10, %s1050_s11  ;;  %s1392_s30 = int_to_ptr.vmem [resolvable:$true] %s943_s30 }
  0x1a   : > { %vm412_vm0 = vcmp.eq.s32.totalorder %v379_v2, %v410_v8  ;;  %vm414_vm1 = vcmp.eq.s32.totalorder %v380_v5, %v410_v8  ;;  %vm411_vm2 = vcmp.eq.s32.totalorder %v379_v2, %v406_v9  ;;  %vm413_vm3 = vcmp.eq.s32.totalorder %v380_v5, %v406_v9  ;;  %s1399_s17 = scalar_lea.sflag [#allocation3], %s363_s27  ;;  %s1114_s21 = scalar_lea.vmem %s1392_s30, 512 }
  0x1b   : > { %vm1055_vm4 = vmpackc.low %vm414_vm1, %vm412_vm0  ;;  %vm391_vm5 = vcmp.eq.s32.totalorder %v379_v2, %v389_v10  ;;  %vm393_vm6 = vcmp.eq.s32.totalorder %v380_v5, %v389_v10  ;;  %vm390_vm7 = vcmp.eq.s32.totalorder %v379_v2, %v385_v11  ;;  %vm392_vm8 = vcmp.eq.s32.totalorder %v380_v5, %v385_v11  ;;  %p1115_p11 = scmp.ne.s32.totalorder %s1392_s30, %s1114_s21  ;;  %s1118_s26 = sshll.u32 %s1181_s25, 4  ;;  %s1119_s26 = int_to_ptr.vmem [resolvable:$false] %s1118_s26 }
  0x1c   : > { %1056 = vmatprep.subr.msk.bf16.mxu1 %vm1055_vm4, %v1179_v12  ;;  %vm1057_vm9 = vmpackc.low %vm413_vm3, %vm411_vm2  ;;  %784 = vperm.xlu0 %1112, %v770_v21   ;;  %v763_v21 = vpack.c.bf16 %v761_v20, %v760_v19  ;;  %s1120_s28 = scalar_lea.vmem %s1119_s26, 1024  ;;  %p1121_p0 = scmp.lt.s32.totalorder %s1392_s30, %s1119_s26 }
  0x1d   : > { %1058 = vmatpush1.bf16.msk.msra.mxu1 %vm1057_vm9, %v1179_v12  ;;  %vm1051_vm11 = vmpackc.low %vm393_vm6, %vm391_vm5  ;;  %789 = vperm.xlu1 %1113, %v771_v22   ;;  %p1116_p12 = pnand %p1115_p11, %p1278_p5  ;;  %p1122_p1 = scmp.lt.s32.totalorder %s1120_s28, %s1114_s21 }
  0x1e   : > { %1052 = vmatprep.subr.msk.bf16.mxu0 %vm1051_vm11, %v1179_v12  ;;  %vm1053_vm12 = vmpackc.low %vm392_vm8, %vm390_vm7 }
  0x1f   : > { %1054 = vmatpush1.bf16.msk.msra.mxu0 %vm1053_vm12, %v1179_v12  ;;  %p1117_p13 = pneg %p1116_p12  ;;  %p1123_p2 = por %p1122_p1, %p1121_p0 }
  0x20   : > { %1035 = vmatmul.mubr.msk.f32.vlgmr.msra.gmra.mrb[0].mxu1 %vm424_vm10, %v423_v13  ;;  %871 = vperm.xlu0 %1112, %v867_v23  }
  0x21   : > { %831 = vmatprep.mubr.bf16.mxu1 %v1180_v14  ;;  %876 = vperm.xlu1 %1113, %v868_v24   ;;  %p1124_p3 = pnand %p1123_p2, %p1117_p13 }
  0x22   : > { %1030 = vmatmul.mubr.msk.f32.vlgmr.msra.gmra.mrb[0].mxu0 %vm424_vm10, %v423_v13 }
  0x23   : > { %632 = vmatprep.mubr.bf16.mxu0 %v1180_v14 }
  0x8f   : > { %v725_v47 = vpop.permute.xlu0 %724  ;;  %v735_v56 = vpop.permute.xlu1 %734 }
  0x93   : > { %v730_v51 = vpop.permute.xlu0 %729  ;;  %v740_v3 = vpop.permute.xlu1 %739 }
  0x97   : > { %v775_v22 = vpop.permute.xlu0 %774 }
  0xf3   : > { %v565_v25 = vpop.f32.mrb[0].mxu1 }
  0xf4   : > { %v584_v26 = vpack.c.bf16 %v565_v25, %v565_v25  ;;  %v567_v27 = vpop.f32.mrb[1].mxu1 }
  0xf5   : > { %v585_v30 = vpack.c.bf16 %v567_v27, %v567_v27  ;;  %v494_v31 = vpop.f32.mrb[0].mxu0 }
  0xf6   : > { %v595_v32 = vsel %vm593_vm13, %v584_v26, 0  ;;  %v576_v33 = vpack.c.bf16 %v494_v31, %v494_v31  ;;  %v496_v34 = vpop.f32.mrb[1].mxu0  ;;  %v780_v26 = vpop.permute.xlu1 %779 }
  0xf7   : > { %1036 = vmatprep.subr.msk.bf16.mxu0 %vm593_vm13, %v585_v30  ;;  %v577_v35 = vpack.c.bf16 %v496_v34, %v496_v34 }
  0xf8   : > { %601 = vmatpush1.bf16.msra.mxu0 %v595_v32  ;;  %v660_v37 = vsel %vm593_vm13, %v576_v33, 0 }
  0xf9   : > { %1039 = vmatprep.subr.msk.bf16.mxu0 %vm593_vm13, %v577_v35 }
  0xfa   : > { %v790_v41 = vpop.permute.xlu1 %789 }
  0xfb   : > { %1037 = vmatmul.mubr.msk.bf16.vlgmr.msra.gmra.mrb[4].mxu0 %vm586_vm14, %v582_v36 }
  0xfc   : > { %666 = vmatpush1.bf16.msra.mxu0 %v660_v37  ;;  %642 = vmatprep.mubr.bf16.mxu0 %v1180_v14  ;;  %v785_v37 = vpop.permute.xlu0 %784 }
 0x103   : > { %1038 = vmatmul.mubr.msk.bf16.gmra.mrb[8].mxu0 %vm586_vm14, %v583_v40 }
 0x104   : > { %697 = vmatprep.mubr.bf16.mxu0 %v1180_v14 }
 0x10b   : > { %1040 = vmatmul.mubr.msk.bf16.vlgmr.msra.gmra.mrb[4].mxu0 %vm586_vm14, %v574_v43 }
 0x10c   : > { %707 = vmatprep.mubr.bf16.mxu0 %v1180_v14 }
 0x113   : > { %1041 = vmatmul.mubr.msk.bf16.gmra.mrb[8].mxu0 %vm586_vm14, %v575_v46 }
 0x1de   : > { %v699_v48 = vpop.f32.mrb[4].mxu0 }
 0x1df   : > { %v742_v49 = vadd.f32 %v725_v47, %v699_v48  ;;  %v701_v50 = vpop.f32.mrb[5].mxu0 }
 0x1e0   : > { %v743_v52 = vadd.f32 %v725_v47, %v701_v50  ;;  %v703_v53 = vpop.f32.mrb[6].mxu0 }
 0x1e1   : > { %v744_v54 = vadd.f32 %v730_v51, %v703_v53  ;;  %v705_v55 = vpop.f32.mrb[7].mxu0  ;;  %v750_v58 = vmax.f32 %v742_v49, 0.0  ;;  %v861_v53 = vld [vmem:[%s1448_s8 + $0x8] sm:$0xff] }
 0x1e2   : > { %v745_v57 = vadd.f32 %v730_v51, %v705_v55  ;;  %v751_v60 = vmax.f32 %v743_v52, 0.0  ;;  %v860_v52 = vld [vmem:[%s1448_s8] sm:$0xff] }
 0x1e3   : > { %v752_v59 = vmax.f32 %v744_v54, 0.0  ;;  %v862_v55 = vpack.c.bf16 %v861_v53, %v860_v52 }
 0x1e4   : > { %v753_v61 = vmax.f32 %v745_v57, 0.0 }
 0x1e5   : > { %v764_v62 = vpack.c.bf16 %v752_v59, %v750_v58 }
 0x1e6   : > { %v765_v63 = vpack.c.bf16 %v753_v61, %v751_v60  ;;  %v709_v0 = vpop.f32.mrb[8].mxu0  ;;  %v877_v60 = vpop.permute.xlu1 %876 }
 0x1e7   : > { %v746_v1 = vadd.f32 %v735_v56, %v709_v0  ;;  %v711_v2 = vpop.f32.mrb[9].mxu0 }
 0x1e8   : > { %v747_v4 = vadd.f32 %v735_v56, %v711_v2  ;;  %v713_v5 = vpop.f32.mrb[10].mxu0  ;;  %799 = vmatprep.subr.bf16.mxu1 %v765_v63  ;;  %v872_v56 = vpop.permute.xlu0 %871 }
 0x1e9   : > { %v748_v6 = vadd.f32 %v740_v3, %v713_v5  ;;  %v715_v7 = vpop.f32.mrb[11].mxu0  ;;  %800 = vmatpush1.bf16.msra.mxu1 %v764_v62  ;;  %v754_v9 = vmax.f32 %v746_v1, 0.0 }
 0x1ea   : > { %v749_v8 = vadd.f32 %v740_v3, %v715_v7  ;;  %v755_v11 = vmax.f32 %v747_v4, 0.0 }
 0x1eb   : > { %v756_v10 = vmax.f32 %v748_v6, 0.0 }
 0x1ec   : > { %v757_v12 = vmax.f32 %v749_v8, 0.0 }
 0x1ed   : > { %v766_v13 = vpack.c.bf16 %v756_v10, %v754_v9 }
 0x1ee   : > { %v767_v17 = vpack.c.bf16 %v757_v12, %v755_v11 }
 0x1f0   : > { %801 = vmatprep.subr.bf16.mxu1 %v767_v17 }
 0x1f1   : > { %802 = vmatpush1.bf16.msra.mxu1 %v766_v13 }
 0x1f4   : > { %1042 = vmatmul.mubr.msk.bf16.vlgmr.msra.gmra.mrb[4].mxu1 %vm792_vm15, %v762_v18 }
 0x1f5   : > { %841 = vmatprep.mubr.bf16.mxu1 %v1180_v14 }
 0x1fc   : > { %1043 = vmatmul.mubr.msk.bf16.gmra.mrb[8].mxu1 %vm792_vm15, %v763_v21 }
 0x1fd   : > { %914 = vmatprep.mubr.bf16.mxu1 %v1180_v14 }
 0x2c7   : > { %v833_v23 = vpop.f32.mrb[4].mxu1 }
 0x2c8   : > { %v834_v24 = vadd.f32 %v833_v23, %v775_v22  ;;  %v835_v25 = vpop.f32.mrb[5].mxu1 }
 0x2c9   : > { %v836_v27 = vadd.f32 %v835_v25, %v775_v22  ;;  %v837_v28 = vpop.f32.mrb[6].mxu1 }
 0x2ca   : > { %v838_v29 = vadd.f32 %v837_v28, %v780_v26  ;;  %v839_v30 = vpop.f32.mrb[7].mxu1  ;;  %v852_v32 = vmax.f32 %v834_v24, 0.0 }
 0x2cb   : > { %v840_v31 = vadd.f32 %v839_v30, %v780_v26  ;;  %v853_v34 = vmax.f32 %v836_v27, 0.0 }
 0x2cc   : > { %v854_v33 = vmax.f32 %v838_v29, 0.0 }
 0x2cd   : > { %v855_v35 = vmax.f32 %v840_v31, 0.0 }
 0x2ce   : > { %v863_v36 = vpack.c.bf16 %v854_v33, %v852_v32 }
 0x2cf   : > { %v864_v38 = vpack.c.bf16 %v855_v35, %v853_v34  ;;  %v843_v39 = vpop.f32.mrb[8].mxu1 }
 0x2d0   : > { %v844_v40 = vadd.f32 %v843_v39, %v785_v37  ;;  %v845_v14 = vpop.f32.mrb[9].mxu1 }
 0x2d1   : > { %v846_v42 = vadd.f32 %v845_v14, %v785_v37  ;;  %v847_v43 = vpop.f32.mrb[10].mxu1  ;;  %882 = vmatprep.subr.bf16.mxu1 %v864_v38 }
 0x2d2   : > { %v848_v44 = vadd.f32 %v847_v43, %v790_v41  ;;  %v849_v45 = vpop.f32.mrb[11].mxu1  ;;  %883 = vmatpush1.bf16.msra.mxu1 %v863_v36  ;;  %v856_v47 = vmax.f32 %v844_v40, 0.0 }
 0x2d3   : > { %v850_v46 = vadd.f32 %v849_v45, %v790_v41  ;;  %v857_v49 = vmax.f32 %v846_v42, 0.0 }
 0x2d4   : > { %v858_v48 = vmax.f32 %v848_v44, 0.0 }
 0x2d5   : > { %v859_v50 = vmax.f32 %v850_v46, 0.0 }
 0x2d6   : > { %v865_v51 = vpack.c.bf16 %v858_v48, %v856_v47 }
 0x2d7   : > { %v866_v54 = vpack.c.bf16 %v859_v50, %v857_v49 }
 0x2d9   : > { %884 = vmatprep.subr.bf16.mxu1 %v866_v54 }
 0x2da   : > { %885 = vmatpush1.bf16.msra.mxu1 %v865_v51 }
 0x2dd   : > { %1044 = vmatmul.mubr.msk.bf16.vlgmr.msra.gmra.mrb[12].mxu1 %vm792_vm15, %v862_v55 }
 0x3b0   : > { %v916_v57 = vpop.f32.mrb[12].mxu1 }
 0x3b1   : > { %v917_v58 = vadd.f32 %v916_v57, %v872_v56  ;;  %v918_v59 = vpop.f32.mrb[13].mxu1 }
 0x3b2   : > { %v919_v61 = vadd.f32 %v918_v59, %v872_v56  ;;  %v920_v62 = vpop.f32.mrb[14].mxu1 }
 0x3b3   : > { %925 = vst [vmem:[%s365_s29] sm:$0xff] %v917_v58  ;;  %v921_v63 = vadd.f32 %v920_v62, %v877_v60  ;;  %v922_v0 = vpop.f32.mrb[15].mxu1 }
 0x3b4   : > { %926 = vst [vmem:[%s365_s29 + $0x8] sm:$0xff] %v919_v61  ;;  %v923_v1 = vadd.f32 %v922_v0, %v877_v60 }
 0x3b5   : > { %927 = vst [vmem:[%s365_s29 + $0x10] sm:$0xff] %v921_v63 }
 0x3b6   : > { %928 = vst [vmem:[%s365_s29 + $0x18] sm:$0xff] %v923_v1 }
 0x3b7   : > { %1127 = shalt.err (!%p1124_p3)
}
 0x3b8   : > { %s1128_s27 = scalar_lea.hbm %s1397_s20, 512  ;;  %s1132_s12 = scalar_lea.hbm %s1450_s10, 1024 }
 0x3b9   : > { %p1129_p4 = scmp.ne.s32.totalorder %s1397_s20, %s1128_s27  ;;  %p1133_p9 = scmp.lt.u32.totalorder %s1397_s20, %s1450_s10 }
 0x3ba   : > { %p1134_p10 = scmp.lt.u32.totalorder %s1132_s12, %s1128_s27  ;;  %p1136_p12 = scmp.lt.u32.totalorder %s1128_s27, %s1397_s20 }
 0x3bb   : > { %p1130_p7 = pnand %p1129_p4, %p1278_p5 }
 0x3bc   : > { %p1135_p11 = por %p1134_p10, %p1133_p9 }
 0x3bd   : > { %p1131_p8 = pneg %p1130_p7 }
 0x3be   : > { %p1137_p13 = por %p1136_p12, %p1135_p11 }
 0x3c0   : > { %p1138_p0 = pnand %p1137_p13, %p1131_p8 }
 0x3c2   : > { %1141 = shalt.err (!%p1138_p0)
}
 0x3c3   : > { %s1182_s21 = smov 256   ;;  %s1183_s26 = smov 512  }
 0x3c4   : > { %s1184_s28 = smov 16  }
 0x3c5   : > { %1067 = dma.vmem_to_hbm [thread:$0]  (%p1278_p5), %s1392_s30, 512, %s1397_s20, %s1399_s17, %s1182_s21, %s1183_s26, %s1184_s28  }
 0x3c6 PF: > { %p1073_p1 = scmp.ge.s32.totalorder %s1176_s16, 2  ;;  %s958_s29 = sand.u32 1, %s1164_s13  }
 0x3c7   : > { %s959_s27 = scalar_lea.sflag [#allocation3], %s958_s29 }
 0x3c8   : > { %p1070_p2 = pnand %p1073_p1, %p1282_p6 }
 0x3ca   : > { %1159 = dma.done.wait (!%p1070_p2), %s959_s27, 512  }
 0x3cb   : > { %1161 = vsyncadd (!%p1070_p2), %s959_s27, 4294966784  ;;  %p20_p3 = scmp.ge.s32.totalorder %s1265_s19, 4   ;;  %s1453_s13 = smov %s1168_s14 }
 0x3cc   : > { %s1454_s14 = smov %s1172_s15  ;;  %s1455_s15 = smov %s1276_s22 }
 0x3cd   : > { %s1456_s16 = smov %s1265_s19  ;;  %22 = sbr.rel (!%p20_p3) target bundleno = 3 (0x3), region = 98 }
 0x3d4   :  { %964 = vsyncpa [#allocation3], 1 }
 0x3d5   :  { %966 = vsyncpa [#allocation3 + $0x1], 1 }

</bundles_post_ra>
